<compile_context>
chip_gen: v6e
topology: v6e:2x2x1
jax: 0.10.0
libtpu: 0.0.40
codegen_flags: <defaults>
</compile_context>

<pallas_src>
import numpy as np
import jax
import jax.numpy as jnp
from jax.experimental import pallas as pl
from jax.experimental.pallas import tpu as pltpu


_LANE = 128
_CHUNK_DEFAULT = 2048          # inner sub-chunk (lanes) processed per loop step
_MAX_TILE_LANES = 512 * 1024   # hard cap on the DMA tile


def _vmem_limit_bytes():
    """Safe scoped-VMEM limit for the current chip (48 MiB on v7x, ~96 MiB on v5e/v6e)."""
    try:
        cap = int(pltpu.get_tpu_info().vmem_capacity_bytes)
    except Exception:
        cap = 64 * 1024 * 1024          # conservative fallback (v7x per-core size)
    return min(int(cap * 0.75), 100 * 1024 * 1024)


def _plan(S, C, itemsize, vmem_limit):
    """Pick (tile, chunk, n_tiles, P, n_half, needs_mask) for the spatial axis."""
    if S < _LANE:
        # tiny input: a single block equal to the full (unpadded) spatial dim
        ts = ck = S
        n_tiles = 1
    else:
        s_dn = (S // _LANE) * _LANE          # largest 128-multiple <= S
        ck = min(_CHUNK_DEFAULT, s_dn)
        # per-lane VMEM of the double-buffered inputs, with sublane padding:
        #   logits: classes padded to 8 (f32) / 16 (bf16) sublanes
        #   target: int8, pessimistically counted as a full 32-sublane tile
        sub = max(1, 32 // itemsize)
        c_pad = ((C + sub - 1) // sub) * sub
        per_lane = 2 * c_pad * itemsize + 2 * 32
        budget = max(vmem_limit - 12 * 1024 * 1024, 4 * 1024 * 1024)
        cap = max(ck, (budget // per_lane) // ck * ck)
        cap = min(cap, _MAX_TILE_LANES)
        ts = min(cap, (s_dn // ck) * ck)     # multiple of ck, never exceeds S
        n_tiles = -(-S // ts)
    if n_tiles >= 2:
        p, n_half = 2, -(-n_tiles // 2)      # feed both TensorCores on v7x
    else:
        p, n_half = 1, n_tiles
    needs_mask = (S % ts != 0) or (p * n_half != n_tiles)
    return ts, ck, n_tiles, p, n_half, needs_mask


def _make_kernel(C, true_s, tile_s, chunk, n_half, needs_mask, use_mxu):
    n_chunks = tile_s // chunk

    def kernel(logits_ref, tgt_ref, m_ref, out_ref, ce_acc, tp_acc, err_acc):
        t = pl.program_id(2)

        @pl.when(t == 0)
        def _():
            ce_acc[...] = jnp.zeros_like(ce_acc)
            tp_acc[...] = jnp.zeros_like(tp_acc)
            err_acc[...] = jnp.zeros_like(err_acc)

        Mf = m_ref[...].astype(jnp.float32)                        # (C, C)

        if needs_mask:
            # logical tile index (unclamped) -> element offset of this block
            base = (pl.program_id(1) * n_half + t) * tile_s

        @pl.loop(0, n_chunks)
        def _(i):
            off = pl.multiple_of(i * chunk, chunk)
            x = logits_ref[0, :, pl.ds(off, chunk)].astype(jnp.float32)   # (C, CK)
            tgt = tgt_ref[0, :, pl.ds(off, chunk)].astype(jnp.int32)      # (1, CK)

            if needs_mask:
                pos = base + off + jax.lax.broadcasted_iota(jnp.int32, (1, chunk), 1)
                valid = pos < true_s
                # boundary blocks may contain undefined data -> neutralize before exp
                x = jnp.where(valid, x, 0.0)

            # numerically stable softmax pieces over the class (sublane) axis
            mx = jnp.max(x, axis=0, keepdims=True)                 # (1, CK)
            e = jnp.exp(x - mx)                                    # (C, CK)
            se = jnp.sum(e, axis=0, keepdims=True)                 # (1, CK)
            lse = mx + jnp.log(se)                                 # (1, CK)

            # Q[k, s] = sum_c M[k, c] * e[c, s]   (unnormalized Wasserstein map)
            if use_mxu:
                # MXU matmul sits in the otherwise-idle vext slot (HBM-bound kernel).
                # Kept in f32 for exactness of the distance matrix.
                Q = jnp.dot(Mf, e, preferred_element_type=jnp.float32)
            else:
                Q = Mf[:, 0:1] * e[0:1, :]
                for c in range(1, C):
                    Q = Q + Mf[:, c:c + 1] * e[c:c + 1, :]         # (C, CK)

            # row gathers by target class (no f32 one-hot materialized):
            #   logit_t[s] = x[t[s], s]      w_num[s] = Q[t[s], s]
            logit_t = jnp.zeros((1, chunk), jnp.float32)
            w_num = jnp.zeros((1, chunk), jnp.float32)
            for k in range(C):
                mk = tgt == k                                      # (1, CK) bool
                logit_t = logit_t + jnp.where(mk, x[k:k + 1, :], 0.0)
                w_num = w_num + jnp.where(mk, Q[k:k + 1, :], 0.0)

            ce_part = lse - logit_t                                # -log softmax[target]

            # one EUP reciprocal + Newton step instead of a (C, CK) divide
            r = pl.reciprocal(se, approx=True)
            r = r * (2.0 - se * r)
            w = w_num * r                                          # wasserstein distance map

            # default weighting mode: alpha = 1 foreground, 0 background
            alpha = (tgt != 0).astype(jnp.float32)
            tp_part = alpha * (1.0 - w)
            err_part = w

            if needs_mask:
                ce_part = jnp.where(valid, ce_part, 0.0)
                tp_part = jnp.where(valid, tp_part, 0.0)
                err_part = jnp.where(valid, err_part, 0.0)

            # lane-partial accumulation (pure VPU); XLU reductions deferred
            ce_acc[...] += ce_part
            tp_acc[...] += tp_part
            err_acc[...] += err_part

        @pl.when(t == pl.num_programs(2) - 1)
        def _():
            ce = jnp.sum(ce_acc[...], keepdims=True)               # (1, 1)
            tp = jnp.sum(tp_acc[...], keepdims=True)
            er = jnp.sum(err_acc[...], keepdims=True)
            out_ref[...] = jnp.concatenate([ce, tp, er], axis=1).reshape(1, 1, 1, 3)

    return kernel


def gwdl_and_ce_loss(net_output, target, dist_matrix,
                     weight_ce=1.0, weight_gwdl=1.0, aggregate='sum'):
    """net_output: (B, C, *spatial) logits (any float dtype); target: (B, 1, *spatial) ints."""
    if aggregate != 'sum':
        raise NotImplementedError('nah son')

    B, C = int(net_output.shape[0]), int(net_output.shape[1])
    S = int(np.prod(net_output.shape[2:]))

    # logits stay in their native dtype (bf16 stays bf16 -> half the HBM bytes)
    x = net_output.reshape(B, C, S)
    # int8 target: 1 B/voxel HBM inside the kernel instead of 4 (lossless for C < 128).
    # Ideally the caller supplies int8 targets directly so this cast is free.
    tgt_dtype = jnp.int8 if C <= 127 else jnp.int32
    tgt = target.reshape(B, 1, S).astype(tgt_dtype)

    # official GWDL normalizes the distance matrix by its max (NaN for all-zero
    # M, same as the PyTorch reference)
    M = (dist_matrix / jnp.max(dist_matrix)).astype(jnp.float32)

    itemsize = jnp.dtype(x.dtype).itemsize
    vmem_limit = _vmem_limit_bytes()
    TS, CHUNK, n_tiles, P, n_half, needs_mask = _plan(S, C, itemsize, vmem_limit)
    use_mxu = C > (8 if itemsize >= 4 else 5)

    def _tile_index(p, t):
        l = p * n_half + t
        if P * n_half != n_tiles:
            # odd tile count: clamp to the last valid block; the in-kernel
            # position mask zeroes the duplicated tile's contribution.
            l = jnp.minimum(l, n_tiles - 1)
        return l

    kernel = _make_kernel(C, S, TS, CHUNK, n_half, needs_mask, use_mxu)

    sums = pl.pallas_call(
        kernel,
        out_shape=jax.ShapeDtypeStruct((B, P, 1, 3), jnp.float32),
        grid_spec=pltpu.PrefetchScalarGridSpec(
            num_scalar_prefetch=0,
            grid=(B, P, n_half),
            in_specs=[
                pl.BlockSpec((1, C, TS), lambda b, p, t: (b, 0, _tile_index(p, t))),
                pl.BlockSpec((1, 1, TS), lambda b, p, t: (b, 0, _tile_index(p, t))),
                pl.BlockSpec((C, C), lambda b, p, t: (0, 0)),
            ],
            out_specs=pl.BlockSpec((1, 1, 1, 3), lambda b, p, t: (b, p, 0, 0)),
            scratch_shapes=[
                pltpu.VMEM((1, CHUNK), jnp.float32),
                pltpu.VMEM((1, CHUNK), jnp.float32),
                pltpu.VMEM((1, CHUNK), jnp.float32),
            ],
        ),
        compiler_params=pltpu.CompilerParams(
            dimension_semantics=("parallel", "parallel", "arbitrary"),
            vmem_limit_bytes=vmem_limit),
    )(x, tgt, M)

    ce_sum = jnp.sum(sums[:, :, 0, 0], axis=1)     # (B,) sum of -log_softmax[target]
    true_pos = jnp.sum(sums[:, :, 0, 1], axis=1)   # (B,) generalized true positives
    all_err = jnp.sum(sums[:, :, 0, 2], axis=1)    # (B,) sum of wasserstein distance map

    # CrossentropyND, reduction='mean' over all voxels
    ce_loss = jnp.sum(ce_sum) / float(B * S)

    # Generalized Wasserstein Dice, default weighting, reduction='mean' over batch
    eps = float(np.spacing(1))
    wass_dice = (2.0 * true_pos + eps) / (2.0 * true_pos + all_err + eps)
    gwdl_loss = jnp.mean(1.0 - wass_dice)

    # TODO(synk): weighting_mode='GDL' (volume-based alpha) not implemented;
    # only the official default mode used by this trainer is covered.
    return weight_ce * ce_loss + weight_gwdl * gwdl_loss


def _reference_loss(net_output, target, dist_matrix, weight_ce=1.0, weight_gwdl=1.0):
    """Pure-JAX reference mirroring the PyTorch module."""
    B, C = int(net_output.shape[0]), int(net_output.shape[1])
    S = int(np.prod(net_output.shape[2:]))
    x = net_output.reshape(B, C, S).astype(jnp.float32)
    t = target.reshape(B, S).astype(jnp.int32)

    logp = jax.nn.log_softmax(x, axis=1)                  # (B, C, S)
    onehot = jax.nn.one_hot(t, C, axis=1)                 # (B, C, S)
    ce = -jnp.mean(jnp.sum(logp * onehot, axis=1))

    M = dist_matrix / jnp.max(dist_matrix)
    probs = jax.nn.softmax(x, axis=1)                     # (B, C, S)
    Mrow = jnp.transpose(M[t], (0, 2, 1))                 # (B, C, S)
    w = jnp.sum(Mrow * probs, axis=1)                     # (B, S)
    alpha_t = (t != 0).astype(jnp.float32)
    tp = jnp.sum(alpha_t * (1.0 - w), axis=1)
    err = jnp.sum(w, axis=1)
    eps = float(np.spacing(1))
    dice = (2.0 * tp + eps) / (2.0 * tp + err + eps)
    gwdl = jnp.mean(1.0 - dice)
    return weight_ce * ce + weight_gwdl * gwdl


if __name__ == "__main__":
    key = jax.random.PRNGKey(0)
    k1, k2, k3, k4 = jax.random.split(key, 4)

    # Case 1: clean tiling (S = 16*16 = 256, multiple of 128), M = 1 - I.
    B, C, H, W = 2, 4, 16, 16
    net_output = jax.random.normal(k1, (B, C, H, W), dtype=jnp.float32)
    target = jax.random.randint(k2, (B, 1, H, W), 0, C, dtype=jnp.int32)
    dist_matrix = jnp.ones((C, C), jnp.float32) - jnp.eye(C, dtype=jnp.float32)

    loss = jax.block_until_ready(
        gwdl_and_ce_loss(net_output, target, dist_matrix, 1.0, 1.0, 'sum'))
    ref = jax.block_until_ready(
        _reference_loss(net_output, target, dist_matrix, 1.0, 1.0))
    assert abs(float(loss) - float(ref)) < 2e-4, (float(loss), float(ref))

    # Case 2: ragged spatial size (S = 17*19 = 323 -> masked boundary block,
    # two-way parallel split), non-uniform distance matrix, non-unit weights.
    B2, C2, H2, W2 = 2, 5, 17, 19
    net_output2 = jax.random.normal(k3, (B2, C2, H2, W2), dtype=jnp.float32)
    target2 = jax.random.randint(k4, (B2, 1, H2, W2), 0, C2, dtype=jnp.int32)
    ii = jnp.arange(C2, dtype=jnp.float32)
    dist_matrix2 = jnp.abs(ii[:, None] - ii[None, :])

    loss2 = jax.block_until_ready(
        gwdl_and_ce_loss(net_output2, target2, dist_matrix2, 0.7, 1.3, 'sum'))
    ref2 = jax.block_until_ready(
        _reference_loss(net_output2, target2, dist_matrix2, 0.7, 1.3))
    assert abs(float(loss2) - float(ref2)) < 2e-4, (float(loss2), float(ref2))

    print("KERNEL_OK")
</pallas_src>

<mosaic_0001>
module attributes {stable_mosaic.version = 11 : i64} {
  func.func @kernel(%arg0: i32, %arg1: i32, %arg2: i32, %arg3: memref<1x4x256xf32, #tpu.memory_space<vmem>>, %arg4: memref<1x1x256xi8, #tpu.memory_space<vmem>>, %arg5: memref<4x4xf32, #tpu.memory_space<vmem>>, %arg6: memref<1x1x1x3xf32, #tpu.memory_space<vmem>>, %arg7: memref<1x256xf32, #tpu.memory_space<vmem>>, %arg8: memref<1x256xf32, #tpu.memory_space<vmem>>, %arg9: memref<1x256xf32, #tpu.memory_space<vmem>>) attributes {dimension_semantics = [#tpu.dimension_semantics<parallel>, #tpu.dimension_semantics<parallel>, #tpu.dimension_semantics<arbitrary>], iteration_bounds = array<i64: 2, 1, 1>, scalar_prefetch = 0 : i64, scratch_operands = 3 : i64, tpu.core_type = #tpu.core_type<tc>, window_params = [{transform_indices = @transform_0, window_bounds = array<i64: 1, 4, 256>}, {transform_indices = @transform_1, window_bounds = array<i64: 1, 1, 256>}, {pipeline_mode = #tpu.pipeline_mode<synchronous>, transform_indices = @transform_2, window_bounds = array<i64: 4, 4>}, {transform_indices = @transform_3, window_bounds = array<i64: 1, 1, 1, 3>}]} {
    %c0_i32 = arith.constant 0 : i32
    %0 = arith.cmpi eq, %arg2, %c0_i32 : i32
    %1 = arith.extui %0 : i1 to i32
    %c0_i32_0 = arith.constant 0 : i32
    %2 = arith.cmpi ne, %1, %c0_i32_0 : i32
    scf.if %2 {
      %cst_39 = arith.constant 0.000000e+00 : f32
      %115 = vector.broadcast %cst_39 : f32 to vector<1x256xf32>
      %c0_40 = arith.constant 0 : index
      %c0_41 = arith.constant 0 : index
      %116 = vector.load %arg7[%c0_40, %c0_41] : memref<1x256xf32, #tpu.memory_space<vmem>>, vector<1x256xf32>
      tpu.vector_store %arg7[%c0_40, %c0_41], %115 {strides = array<i32>} : memref<1x256xf32, #tpu.memory_space<vmem>>, vector<1x256xf32>,
      %cst_42 = arith.constant 0.000000e+00 : f32
      %117 = vector.broadcast %cst_42 : f32 to vector<1x256xf32>
      %c0_43 = arith.constant 0 : index
      %c0_44 = arith.constant 0 : index
      %118 = vector.load %arg8[%c0_43, %c0_44] : memref<1x256xf32, #tpu.memory_space<vmem>>, vector<1x256xf32>
      tpu.vector_store %arg8[%c0_43, %c0_44], %117 {strides = array<i32>} : memref<1x256xf32, #tpu.memory_space<vmem>>, vector<1x256xf32>,
      %cst_45 = arith.constant 0.000000e+00 : f32
      %119 = vector.broadcast %cst_45 : f32 to vector<1x256xf32>
      %c0_46 = arith.constant 0 : index
      %c0_47 = arith.constant 0 : index
      %120 = vector.load %arg9[%c0_46, %c0_47] : memref<1x256xf32, #tpu.memory_space<vmem>>, vector<1x256xf32>
      tpu.vector_store %arg9[%c0_46, %c0_47], %119 {strides = array<i32>} : memref<1x256xf32, #tpu.memory_space<vmem>>, vector<1x256xf32>,
    } else {
    }
    %c0 = arith.constant 0 : index
    %c0_1 = arith.constant 0 : index
    %3 = vector.load %arg5[%c0, %c0_1] : memref<4x4xf32, #tpu.memory_space<vmem>>, vector<4x4xf32>
    %c0_i32_2 = arith.constant 0 : i32
    %c1_i32 = arith.constant 1 : i32
    %4 = arith.muli %c0_i32_2, %c1_i32 : i32
    %c0_i32_3 = arith.constant 0 : i32
    %5 = arith.addi %c0_i32_3, %4 : i32
    %c256_i32 = arith.constant 256 : i32
    %6 = arith.muli %5, %c256_i32 : i32
    %7 = tpu.assume_multiple %6, 256 : i32
    %c0_4 = arith.constant 0 : index
    %c0_5 = arith.constant 0 : index
    %8 = arith.index_cast %7 : i32 to index
    %9 = vector.load %arg3[%c0_4, %c0_5, %8] : memref<1x4x256xf32, #tpu.memory_space<vmem>>, vector<1x4x256xf32>
    %10 = vector.shape_cast %9 : vector<1x4x256xf32> to vector<4x256xf32>
    %c0_6 = arith.constant 0 : index
    %c0_7 = arith.constant 0 : index
    %11 = arith.index_cast %7 : i32 to index
    %12 = vector.load %arg4[%c0_6, %c0_7, %11] : memref<1x1x256xi8, #tpu.memory_space<vmem>>, vector<1x1x256xi8>
    %13 = vector.shape_cast %12 : vector<1x1x256xi8> to vector<1x256xi8>
    %14 = arith.extsi %13 : vector<1x256xi8> to vector<1x256xi32>
    %cst = arith.constant dense<0xFF800000> : vector<256xf32>
    %15 = vector.multi_reduction <maximumf>, %10, %cst [0] : vector<4x256xf32> to vector<256xf32>
    %16 = vector.shape_cast %15 : vector<256xf32> to vector<1x256xf32>
    %17 = vector.broadcast %16 : vector<1x256xf32> to vector<4x256xf32>
    %18 = arith.subf %10, %17 : vector<4x256xf32>
    %19 = math.exp %18 : vector<4x256xf32>
    %cst_8 = arith.constant dense<0.000000e+00> : vector<256xf32>
    %20 = vector.multi_reduction <add>, %19, %cst_8 [0] : vector<4x256xf32> to vector<256xf32>
    %21 = vector.shape_cast %20 : vector<256xf32> to vector<1x256xf32>
    %22 = math.log %21 : vector<1x256xf32>
    %23 = arith.addf %16, %22 : vector<1x256xf32>
    %24 = vector.extract_strided_slice %3 {offsets = [0, 0], sizes = [4, 1], strides = [1, 1]} : vector<4x4xf32> to vector<4x1xf32>
    %25 = vector.extract_strided_slice %19 {offsets = [0, 0], sizes = [1, 256], strides = [1, 1]} : vector<4x256xf32> to vector<1x256xf32>
    %26 = vector.broadcast %24 : vector<4x1xf32> to vector<4x256xf32>
    %27 = vector.broadcast %25 : vector<1x256xf32> to vector<4x256xf32>
    %28 = arith.mulf %26, %27 : vector<4x256xf32>
    %29 = vector.extract_strided_slice %3 {offsets = [0, 1], sizes = [4, 1], strides = [1, 1]} : vector<4x4xf32> to vector<4x1xf32>
    %30 = vector.extract_strided_slice %19 {offsets = [1, 0], sizes = [1, 256], strides = [1, 1]} : vector<4x256xf32> to vector<1x256xf32>
    %31 = vector.broadcast %29 : vector<4x1xf32> to vector<4x256xf32>
    %32 = vector.broadcast %30 : vector<1x256xf32> to vector<4x256xf32>
    %33 = arith.mulf %31, %32 : vector<4x256xf32>
    %34 = arith.addf %28, %33 : vector<4x256xf32>
    %35 = vector.extract_strided_slice %3 {offsets = [0, 2], sizes = [4, 1], strides = [1, 1]} : vector<4x4xf32> to vector<4x1xf32>
    %36 = vector.extract_strided_slice %19 {offsets = [2, 0], sizes = [1, 256], strides = [1, 1]} : vector<4x256xf32> to vector<1x256xf32>
    %37 = vector.broadcast %35 : vector<4x1xf32> to vector<4x256xf32>
    %38 = vector.broadcast %36 : vector<1x256xf32> to vector<4x256xf32>
    %39 = arith.mulf %37, %38 : vector<4x256xf32>
    %40 = arith.addf %34, %39 : vector<4x256xf32>
    %41 = vector.extract_strided_slice %3 {offsets = [0, 3], sizes = [4, 1], strides = [1, 1]} : vector<4x4xf32> to vector<4x1xf32>
    %42 = vector.extract_strided_slice %19 {offsets = [3, 0], sizes = [1, 256], strides = [1, 1]} : vector<4x256xf32> to vector<1x256xf32>
    %43 = vector.broadcast %41 : vector<4x1xf32> to vector<4x256xf32>
    %44 = vector.broadcast %42 : vector<1x256xf32> to vector<4x256xf32>
    %45 = arith.mulf %43, %44 : vector<4x256xf32>
    %46 = arith.addf %40, %45 : vector<4x256xf32>
    %cst_9 = arith.constant 0.000000e+00 : f32
    %47 = vector.broadcast %cst_9 : f32 to vector<1x256xf32>
    %cst_10 = arith.constant 0.000000e+00 : f32
    %48 = vector.broadcast %cst_10 : f32 to vector<1x256xf32>
    %c0_i32_11 = arith.constant 0 : i32
    %49 = vector.broadcast %c0_i32_11 : i32 to vector<1x256xi32>
    %50 = arith.cmpi eq, %14, %49 : vector<1x256xi32>
    %51 = vector.extract_strided_slice %10 {offsets = [0, 0], sizes = [1, 256], strides = [1, 1]} : vector<4x256xf32> to vector<1x256xf32>
    %cst_12 = arith.constant 0.000000e+00 : f32
    %52 = vector.broadcast %cst_12 : f32 to vector<1x256xf32>
    %53 = arith.select %50, %51, %52 : vector<1x256xi1>, vector<1x256xf32>
    %54 = arith.addf %47, %53 : vector<1x256xf32>
    %55 = vector.extract_strided_slice %46 {offsets = [0, 0], sizes = [1, 256], strides = [1, 1]} : vector<4x256xf32> to vector<1x256xf32>
    %cst_13 = arith.constant 0.000000e+00 : f32
    %56 = vector.broadcast %cst_13 : f32 to vector<1x256xf32>
    %57 = arith.select %50, %55, %56 : vector<1x256xi1>, vector<1x256xf32>
    %58 = arith.addf %48, %57 : vector<1x256xf32>
    %c1_i32_14 = arith.constant 1 : i32
    %59 = vector.broadcast %c1_i32_14 : i32 to vector<1x256xi32>
    %60 = arith.cmpi eq, %14, %59 : vector<1x256xi32>
    %61 = vector.extract_strided_slice %10 {offsets = [1, 0], sizes = [1, 256], strides = [1, 1]} : vector<4x256xf32> to vector<1x256xf32>
    %cst_15 = arith.constant 0.000000e+00 : f32
    %62 = vector.broadcast %cst_15 : f32 to vector<1x256xf32>
    %63 = arith.select %60, %61, %62 : vector<1x256xi1>, vector<1x256xf32>
    %64 = arith.addf %54, %63 : vector<1x256xf32>
    %65 = vector.extract_strided_slice %46 {offsets = [1, 0], sizes = [1, 256], strides = [1, 1]} : vector<4x256xf32> to vector<1x256xf32>
    %cst_16 = arith.constant 0.000000e+00 : f32
    %66 = vector.broadcast %cst_16 : f32 to vector<1x256xf32>
    %67 = arith.select %60, %65, %66 : vector<1x256xi1>, vector<1x256xf32>
    %68 = arith.addf %58, %67 : vector<1x256xf32>
    %c2_i32 = arith.constant 2 : i32
    %69 = vector.broadcast %c2_i32 : i32 to vector<1x256xi32>
    %70 = arith.cmpi eq, %14, %69 : vector<1x256xi32>
    %71 = vector.extract_strided_slice %10 {offsets = [2, 0], sizes = [1, 256], strides = [1, 1]} : vector<4x256xf32> to vector<1x256xf32>
    %cst_17 = arith.constant 0.000000e+00 : f32
    %72 = vector.broadcast %cst_17 : f32 to vector<1x256xf32>
    %73 = arith.select %70, %71, %72 : vector<1x256xi1>, vector<1x256xf32>
    %74 = arith.addf %64, %73 : vector<1x256xf32>
    %75 = vector.extract_strided_slice %46 {offsets = [2, 0], sizes = [1, 256], strides = [1, 1]} : vector<4x256xf32> to vector<1x256xf32>
    %cst_18 = arith.constant 0.000000e+00 : f32
    %76 = vector.broadcast %cst_18 : f32 to vector<1x256xf32>
    %77 = arith.select %70, %75, %76 : vector<1x256xi1>, vector<1x256xf32>
    %78 = arith.addf %68, %77 : vector<1x256xf32>
    %c3_i32 = arith.constant 3 : i32
    %79 = vector.broadcast %c3_i32 : i32 to vector<1x256xi32>
    %80 = arith.cmpi eq, %14, %79 : vector<1x256xi32>
    %81 = vector.extract_strided_slice %10 {offsets = [3, 0], sizes = [1, 256], strides = [1, 1]} : vector<4x256xf32> to vector<1x256xf32>
    %cst_19 = arith.constant 0.000000e+00 : f32
    %82 = vector.broadcast %cst_19 : f32 to vector<1x256xf32>
    %83 = arith.select %80, %81, %82 : vector<1x256xi1>, vector<1x256xf32>
    %84 = arith.addf %74, %83 : vector<1x256xf32>
    %85 = vector.extract_strided_slice %46 {offsets = [3, 0], sizes = [1, 256], strides = [1, 1]} : vector<4x256xf32> to vector<1x256xf32>
    %cst_20 = arith.constant 0.000000e+00 : f32
    %86 = vector.broadcast %cst_20 : f32 to vector<1x256xf32>
    %87 = arith.select %80, %85, %86 : vector<1x256xi1>, vector<1x256xf32>
    %88 = arith.addf %78, %87 : vector<1x256xf32>
    %89 = arith.subf %23, %84 : vector<1x256xf32>
    %90 = tpu.reciprocal %21 {approx = true} : vector<1x256xf32> -> vector<1x256xf32>
    %91 = arith.mulf %21, %90 : vector<1x256xf32>
    %cst_21 = arith.constant 2.000000e+00 : f32
    %92 = vector.broadcast %cst_21 : f32 to vector<1x256xf32>
    %93 = arith.subf %92, %91 : vector<1x256xf32>
    %94 = arith.mulf %90, %93 : vector<1x256xf32>
    %95 = arith.mulf %88, %94 : vector<1x256xf32>
    %c0_i32_22 = arith.constant 0 : i32
    %96 = vector.broadcast %c0_i32_22 : i32 to vector<1x256xi32>
    %97 = arith.cmpi ne, %14, %96 : vector<1x256xi32>
    %98 = arith.extui %97 : vector<1x256xi1> to vector<1x256xi32>
    %99 = arith.sitofp %98 : vector<1x256xi32> to vector<1x256xf32>
    %cst_23 = arith.constant 1.000000e+00 : f32
    %100 = vector.broadcast %cst_23 : f32 to vector<1x256xf32>
    %101 = arith.subf %100, %95 : vector<1x256xf32>
    %102 = arith.mulf %99, %101 : vector<1x256xf32>
    %c0_24 = arith.constant 0 : index
    %c0_25 = arith.constant 0 : index
    %103 = vector.load %arg7[%c0_24, %c0_25] : memref<1x256xf32, #tpu.memory_space<vmem>>, vector<1x256xf32>
    %104 = arith.addf %103, %89 : vector<1x256xf32>
    %c0_26 = arith.constant 0 : index
    %c0_27 = arith.constant 0 : index
    %105 = vector.load %arg7[%c0_26, %c0_27] : memref<1x256xf32, #tpu.memory_space<vmem>>, vector<1x256xf32>
    tpu.vector_store %arg7[%c0_26, %c0_27], %104 {strides = array<i32>} : memref<1x256xf32, #tpu.memory_space<vmem>>, vector<1x256xf32>,
    %c0_28 = arith.constant 0 : index
    %c0_29 = arith.constant 0 : index
    %106 = vector.load %arg8[%c0_28, %c0_29] : memref<1x256xf32, #tpu.memory_space<vmem>>, vector<1x256xf32>
    %107 = arith.addf %106, %102 : vector<1x256xf32>
    %c0_30 = arith.constant 0 : index
    %c0_31 = arith.constant 0 : index
    %108 = vector.load %arg8[%c0_30, %c0_31] : memref<1x256xf32, #tpu.memory_space<vmem>>, vector<1x256xf32>
    tpu.vector_store %arg8[%c0_30, %c0_31], %107 {strides = array<i32>} : memref<1x256xf32, #tpu.memory_space<vmem>>, vector<1x256xf32>,
    %c0_32 = arith.constant 0 : index
    %c0_33 = arith.constant 0 : index
    %109 = vector.load %arg9[%c0_32, %c0_33] : memref<1x256xf32, #tpu.memory_space<vmem>>, vector<1x256xf32>
    %110 = arith.addf %109, %95 : vector<1x256xf32>
    %c0_34 = arith.constant 0 : index
    %c0_35 = arith.constant 0 : index
    %111 = vector.load %arg9[%c0_34, %c0_35] : memref<1x256xf32, #tpu.memory_space<vmem>>, vector<1x256xf32>
    tpu.vector_store %arg9[%c0_34, %c0_35], %110 {strides = array<i32>} : memref<1x256xf32, #tpu.memory_space<vmem>>, vector<1x256xf32>,
    %c1_i32_36 = arith.constant 1 : i32
    %c0_i32_37 = arith.constant 0 : i32
    %112 = arith.cmpi eq, %arg2, %c0_i32_37 : i32
    %113 = arith.extui %112 : i1 to i32
    %c0_i32_38 = arith.constant 0 : i32
    %114 = arith.cmpi ne, %113, %c0_i32_38 : i32
    scf.if %114 {
      %c0_39 = arith.constant 0 : index
      %c0_40 = arith.constant 0 : index
      %115 = vector.load %arg7[%c0_39, %c0_40] : memref<1x256xf32, #tpu.memory_space<vmem>>, vector<1x256xf32>
      %116 = vector.shape_cast %115 : vector<1x256xf32> to vector<1x1x256xf32>
      %cst_41 = arith.constant dense<0.000000e+00> : vector<1xf32>
      %117 = vector.multi_reduction <add>, %116, %cst_41 [1, 2] : vector<1x1x256xf32> to vector<1xf32>
      %118 = vector.shape_cast %117 : vector<1xf32> to vector<1x1x1xf32>
      %119 = vector.extract %118[0, 0, 0] : f32 from vector<1x1x1xf32>
      %120 = vector.broadcast %119 : f32 to vector<1x1xf32>
      %c0_42 = arith.constant 0 : index
      %c0_43 = arith.constant 0 : index
      %121 = vector.load %arg8[%c0_42, %c0_43] : memref<1x256xf32, #tpu.memory_space<vmem>>, vector<1x256xf32>
      %122 = vector.shape_cast %121 : vector<1x256xf32> to vector<1x1x256xf32>
      %cst_44 = arith.constant dense<0.000000e+00> : vector<1xf32>
      %123 = vector.multi_reduction <add>, %122, %cst_44 [1, 2] : vector<1x1x256xf32> to vector<1xf32>
      %124 = vector.shape_cast %123 : vector<1xf32> to vector<1x1x1xf32>
      %125 = vector.extract %124[0, 0, 0] : f32 from vector<1x1x1xf32>
      %126 = vector.broadcast %125 : f32 to vector<1x1xf32>
      %c0_45 = arith.constant 0 : index
      %c0_46 = arith.constant 0 : index
      %127 = vector.load %arg9[%c0_45, %c0_46] : memref<1x256xf32, #tpu.memory_space<vmem>>, vector<1x256xf32>
      %128 = vector.shape_cast %127 : vector<1x256xf32> to vector<1x1x256xf32>
      %cst_47 = arith.constant dense<0.000000e+00> : vector<1xf32>
      %129 = vector.multi_reduction <add>, %128, %cst_47 [1, 2] : vector<1x1x256xf32> to vector<1xf32>
      %130 = vector.shape_cast %129 : vector<1xf32> to vector<1x1x1xf32>
      %131 = vector.extract %130[0, 0, 0] : f32 from vector<1x1x1xf32>
      %132 = vector.broadcast %131 : f32 to vector<1x1xf32>
      %133 = tpu.concatenate %120, %126, %132 in 1 : vector<1x1xf32>, vector<1x1xf32>, vector<1x1xf32> -> vector<1x3xf32>
      %134 = vector.shape_cast %133 : vector<1x3xf32> to vector<1x1x1x3xf32>
      %c0_48 = arith.constant 0 : index
      %c0_49 = arith.constant 0 : index
      %c0_50 = arith.constant 0 : index
      %c0_51 = arith.constant 0 : index
      %135 = vector.load %arg6[%c0_48, %c0_49, %c0_50, %c0_51] : memref<1x1x1x3xf32, #tpu.memory_space<vmem>>, vector<1x1x1x3xf32>
      tpu.vector_store %arg6[%c0_48, %c0_49, %c0_50, %c0_51], %134 {strides = array<i32>} : memref<1x1x1x3xf32, #tpu.memory_space<vmem>>, vector<1x1x1x3xf32>,
    } else {
    }
    return
  }
  func.func @transform_0(%arg0: i32, %arg1: i32, %arg2: i32) -> (i32, i32, i32) {
    %c1_i32 = arith.constant 1 : i32
    %0 = arith.muli %arg1, %c1_i32 : i32
    %1 = arith.addi %0, %arg2 : i32
    %c0_i32 = arith.constant 0 : i32
    %c0_i32_0 = arith.constant 0 : i32
    return %arg0, %c0_i32, %1 : i32, i32, i32
  }
  func.func @transform_1(%arg0: i32, %arg1: i32, %arg2: i32) -> (i32, i32, i32) {
    %c1_i32 = arith.constant 1 : i32
    %0 = arith.muli %arg1, %c1_i32 : i32
    %1 = arith.addi %0, %arg2 : i32
    %c0_i32 = arith.constant 0 : i32
    %c0_i32_0 = arith.constant 0 : i32
    return %arg0, %c0_i32, %1 : i32, i32, i32
  }
  func.func @transform_2(%arg0: i32, %arg1: i32, %arg2: i32) -> (i32, i32) {
    %c0_i32 = arith.constant 0 : i32
    %c0_i32_0 = arith.constant 0 : i32
    %c0_i32_1 = arith.constant 0 : i32
    return %c0_i32, %c0_i32_0 : i32, i32
  }
  func.func @transform_3(%arg0: i32, %arg1: i32, %arg2: i32) -> (i32, i32, i32, i32) {
    %c0_i32 = arith.constant 0 : i32
    %c0_i32_0 = arith.constant 0 : i32
    %c0_i32_1 = arith.constant 0 : i32
    return %arg0, %arg1, %c0_i32, %c0_i32_0 : i32, i32, i32, i32
  }
}

</mosaic_0001>

<bundles_post_ra>
// kernel: tpu_custom_call.1
= control target key start
LH: loop header
LB: loop body
LE: loop exit
PB: predicated region body
PF: predicated region fallthrough
CT: control target
= control target key end

     0   :  { %8 = vsyncpa [#allocation6], 0  ;;  %s1297_s0 = inlined_call_operand.hbm [shape: f32[2,4,256], index: 0, kind: input, shape index: {}]   ;;  %s1298_s1 = inlined_call_operand.vmem [shape: s8[2,1,256], index: 1, kind: input, shape index: {}]   ;;  %s1299_s2 = inlined_call_operand.vmem [shape: f32[4,4], index: 2, kind: input, shape index: {}]   ;;  %s1300_s3 = inlined_call_operand.hbm [shape: f32[2,1,1,3], index: 3, kind: output, shape index: {}]  }
   0x1   :  { %10 = vsyncpa [#allocation6 + $0x1], 0 }
   0x2   :  { %11 = vsyncpa [#allocation7], 0 }
   0x3   :  { %13 = vsyncpa [#allocation7 + $0x1], 0  ;;  %s1003_s12 = smov 0   ;;  %s1005_s13 = smov 0  }
   0x4   :  { %s1007_s14 = smov 0   ;;  %s1009_s15 = smov 0  }
   0x5   :  { %s1011_s16 = smov 0   ;;  %s1013_s17 = smov 0  }
   0x6 LB: > { %s754_s18 = sadd.s32 4294967295, %s973_s17   ;;  %s755_s19 = sadd.s32 4294967294, %s973_s17   ;;  %s973_s17 = sphi %s1013_s17, %s19_s17   ;;  %s969_s16 = sphi %s1011_s16, %s1314_s16   ;;  %s965_s15 = sphi %s1009_s15, %s1313_s15   ;;  %s961_s14 = sphi %s1007_s14, %s1312_s14   ;;  %s957_s13 = sphi %s1005_s13, %s1311_s13   ;;  %s953_s12 = sphi %s1003_s12, %s1310_s12  }
   0x7   : > { %s38_s20 = sadd.s32 1, %s969_s16  ;;  %s49_s21 = sadd.s32 1, %s961_s14 }
   0x8   : > { %p40_p0 = scmp.ge.s32.totalorder %s38_s20, 2  ;;  %p56_p1 = scmp.ne.s32.totalorder %s961_s14, %s957_s13 }
   0x9   : > { %p57_p2 = scmp.eq.s32.totalorder %s973_s17, 0  ;;  %p62_p3 = scmp.ne.s32.totalorder %s957_s13, %s953_s12 }
   0xa   : > { %s1316_s20 = smov (%p40_p0, %s38_s20), 0  ;;  %p63_p5 = scmp.eq.s32.totalorder %s754_s18, 0 }
   0xb   : > { %p1044_p4 = por %p57_p2, %p56_p1  ;;  %s44_s23 = ssub.s32 %s969_s16, %s1316_s20 }
   0xc   : > { %p139_p6 = scmp.eq.s32.totalorder %s754_s18, 1  ;;  %p47_p7 = scmp.eq.s32.totalorder %s44_s23, 0 }
   0xd   : > { %p1050_p8 = por %p63_p5, %p62_p3  ;;  %p145_p10 = scmp.eq.s32.totalorder %s755_s19, 1 }
   0xe   : > { %p1054_p9 = por %p139_p6, %p56_p1  ;;  %p793_p13 = scmp.lt.s32.totalorder %s973_s17, 2 }
   0xf   : > { %s1059_s26 = scalar_select %p47_p7, %s961_s14, %s49_s21  }
  0x10   : > { %p1061_p11 = por %p145_p10, %p62_p3  ;;  %s168_s28 = sand.u32 1, %s961_s14  }
  0x11   : > { %s758_s29 = sshll.u32 %s168_s28, 3  ;;  %s774_s30 = sshll.u32 %s969_s16, 7 }
  0x12   : > { %s1304_s27 = scalar_select %p1061_p11, 1, 0 }
  0x13   : > { %s181_s6 = scalar_lea.hbm %s1297_s0, %s774_s30  ;;  %s172_s7 = scalar_lea.vmem [#allocation5], %s758_s29 }
  0x14   : > { %s183_s8 = sshll.u32 %s172_s7, 4  ;;  %p1074_p0 = pnand %p793_p13, %p1044_p4  ;;  %s184_s8 = int_to_ptr.vmem [resolvable:$true] %s183_s8 }
  0x15   : > { %p761_p1 = scmp.ge.s32.totalorder %s973_s17, 1  ;;  %p202_p2 = scmp.lt.s32.totalorder %s973_s17, 3 }
  0x16   : > { %s169_s10 = scalar_lea.sflag [#allocation6], %s168_s28  ;;  %p867_p3 = pneg %p1074_p0 }
  0x17   : > { %s878_s11 = scalar_lea.vmem %s184_s8, 128  ;;  %s975_s18 = smov [#allocation5]  }
  0x18   : > { %p879_p5 = scmp.ne.s32.totalorder %s184_s8, %s878_s11  ;;  %s883_s19 = sshll.u32 %s975_s18, 4  ;;  %s884_s19 = int_to_ptr.vmem [resolvable:$false] %s883_s19 }
  0x19   : > { %s885_s21 = scalar_lea.vmem %s884_s19, 256  ;;  %p886_p10 = scmp.lt.s32.totalorder %s184_s8, %s884_s19 }
  0x1a   : > { %p881_p6 = pnand %p879_p5, %p867_p3  ;;  %p887_p12 = scmp.lt.s32.totalorder %s885_s21, %s878_s11 }
  0x1c   : > { %p882_p7 = pneg %p881_p6  ;;  %p888_p4 = por %p887_p12, %p886_p10 }
  0x1e   : > { %p889_p13 = pnand %p888_p4, %p882_p7 }
  0x20   : > { %892 = shalt.err (!%p889_p13)
}
  0x21   : > { %788 = dma.hbm_to_vmem [thread:$0]  (!%p1074_p0), %s181_s6, 128, %s184_s8, %s169_s10  }
  0x22   : > { %p203_p11 = pnand %p761_p1, %p202_p2 }
  0x23   : > { %s1089_s22 = sand.u32 (!%p203_p11), 1, %s957_s13  }
  0x24   : > { %206 = sbr.rel (%p203_p11) target bundleno = 436 (0x1b4), region = 32  ;;  %s762_s23 = sshll.u32 (!%p203_p11), %s1089_s22, 3 }
  0x25   : > { %s209_s28 = scalar_lea.sflag (!%p203_p11), [#allocation6], %s1089_s22  ;;  %s212_s29 = scalar_lea.vmem (!%p203_p11), [#allocation5], %s762_s23 }
  0x29   : > { %944 = dma.done.wait (%p1050_p8), %s209_s28, 128  }
  0x2a   : > { %946 = vsyncadd (%p1050_p8), %s209_s28, 4294967168  ;;  %p247_p12 = scmp.lt.s32.totalorder %s965_s15, 1  ;;  %v976_v0 = vmov 0   ;;  %v977_v1 = vmov 2   ;;  %v260_v2 = vlaneseq  ;;  %v978_v4 = vmov 0.0   ;;  %v1115_v6 = vld [vmem:[%s212_s29] sm:$0xff] }
  0x2b   : > { %849 = vset.pattern.permute.xlu0 %v976_v0  ;;  %851 = vset.pattern.permute.xlu1 %v977_v1  ;;  %vm274_vm1 = vcmask 1043456   ;;  %v267_v5 = vld [vmem:[%s1299_s2] sm:$0xf]  ;;  %v272_v8 = vcombine.high %v1115_v6, %v1115_v6  ;;  %v979_v15 = vmov 1   ;;  %v980_v16 = vmov 3   ;;  %s771_s11 = sshll.u32 %s965_s15, 4 }
  0x2c   : > { %s248_s30 = scalar_select %p247_p12, %s965_s15, 1  ;;  %vm1099_vm0 = vcmp.lt.s32.totalorder %v260_v2, 256  ;;  %321 = vperm.xlu0 %849, %v267_v5   ;;  %371 = vperm.xlu1 %851, %v267_v5   ;;  %v275_v9 = vsel %vm274_vm1, %v1115_v6, -inf  ;;  %v1134_v30 = vshrl.u32 %v260_v2, 7  ;;  %v764_v58 = vrot.slane %v1115_v6, 9 }
  0x2d   : > { %264 = vst.msk [vmem:[#allocation2] sm:$0x3] %vm1099_vm0, %v978_v4  ;;  %265 = vst.msk [vmem:[#allocation3] sm:$0x3] %vm1099_vm0, %v978_v4  ;;  %v276_v10 = vrot.slane %v275_v9, 4  ;;  %v282_v12 = vsel %vm274_vm1, %v272_v8, -inf  ;;  %s1255_s29 = scalar_lea.hbm %s1300_s3, %s771_s11 }
  0x2e   : > { %s763_s4 = sshll.u32 %s248_s30, 1  ;;  %266 = vst.msk [vmem:[#allocation4] sm:$0x3] %vm1099_vm0, %v978_v4  ;;  %v283_v14 = vrot.slane %v282_v12, 4  ;;  %v330_v31 = vsub.s32 4, %v1134_v30  ;;  %v1138_v32 = vsub.s32 2, %v1134_v30 }
  0x2f   : > { %s253_s6 = scalar_lea.vmem %s1298_s1, %s763_s4  ;;  %v277_v13 = vmax.f32 %v275_v9, %v276_v10  ;;  %v380_v33 = vsub.s32 6, %v1134_v30  ;;  %v354_v34 = vsub.s32 5, %v1134_v30  ;;  %v1145_v36 = vsub.s32 3, %v1134_v30  ;;  %s242_s18 = scalar_lea.vmem [#allocation8], %s1089_s22 }
  0x30   : > { %v269_v7 = vld [vmem:[%s253_s6] sm:$0x3]  ;;  %850 = vset.pattern.permute.xlu0 %v979_v15  ;;  %852 = vset.pattern.permute.xlu1 %v980_v16  ;;  %v284_v18 = vmax.f32 %v282_v12, %v283_v14  ;;  %v406_v40 = vsub.s32 7, %v1134_v30  ;;  %v766_v1 = vrot.slane %v1115_v6, 10  ;;  %v1196_v12 = vsub.s32 0, %v1134_v30  ;;  %s657_s19 = sshll.u32 %s242_s18, 4  ;;  %s658_s19 = int_to_ptr.vmem [resolvable:$true] %s657_s19 }
  0x31   : > { %v1121_v11 = vunpack.c.0.s8 %v269_v7  ;;  %345 = vperm.xlu0 %850, %v267_v5   ;;  %397 = vperm.xlu1 %852, %v267_v5   ;;  %v278_v17 = vrot.slane %v277_v13, 2  ;;  %v768_v7 = vrot.slane %v1115_v6, 11  ;;  %vm573_vm7 = vcmask 1040384   ;;  %s644_s30 = scalar_lea.sflag [#allocation7], %s1089_s22  ;;  %s893_s4 = scalar_lea.vmem %s658_s19, 16 }
  0x32   : > { %v285_v21 = vrot.slane %v284_v18, 2  ;;  %vm637_vm8 = vcmask 7168   ;;  %vm639_vm9 = vcmask 15360   ;;  %vm641_vm10 = vcmask 16384   ;;  %p894_p8 = scmp.ne.s32.totalorder %s658_s19, %s893_s4  ;;  %s982_s15 = smov [#allocation8]  }
  0x33   : > { %vm490_vm2 = vcmp.ne.s32.totalorder %v1121_v11, 0  ;;  %v279_v20 = vmax.f32 %v277_v13, %v278_v17  ;;  %vm422_vm3 = vcmp.eq.s32.totalorder %v1121_v11, 0  ;;  %vm431_vm4 = vcmp.eq.s32.totalorder %v1121_v11, 1  ;;  %s897_s24 = sshll.u32 %s982_s15, 4  ;;  %s898_s24 = int_to_ptr.vmem [resolvable:$false] %s897_s24 }
  0x34   : > { %v1125_v19 = vsel %vm490_vm2, 1.0, %v978_v4  ;;  %v286_v23 = vmax.f32 %v284_v18, %v285_v21  ;;  %v423_v63 = vsel %vm422_vm3, %v1115_v6, 0.0  ;;  %v435_v0 = vsel %vm431_vm4, %v764_v58, 0.0  ;;  %p895_p11 = pnand %p894_p8, %p1054_p9  ;;  %s899_s5 = scalar_lea.vmem %s898_s24, 32 }
  0x35   : > { %v280_v22 = vrot.slane %v279_v20, 1  ;;  %853 = vset.pattern.permute.xlu0 %v980_v16  ;;  %vm442_vm5 = vcmp.eq.s32.totalorder %v1121_v11, 2  ;;  %v436_v4 = vadd.f32 %v435_v0, %v423_v63  ;;  %vm453_vm6 = vcmp.eq.s32.totalorder %v1121_v11, 3  ;;  %p900_p1 = scmp.lt.s32.totalorder %s658_s19, %s898_s24  ;;  %p901_p2 = scmp.lt.s32.totalorder %s899_s5, %s893_s4 }
  0x36   : > { %v287_v25 = vrot.slane %v286_v23, 1  ;;  %v446_v5 = vsel %vm442_vm5, %v766_v1, 0.0  ;;  %v457_v9 = vsel %vm453_vm6, %v768_v7, 0.0  ;;  %v981_v13 = vmov 1966171168   ;;  %p896_p0 = pneg %p895_p11 }
  0x37   : > { %v1127_v24 = vmax.f32 %v279_v20, %v280_v22  ;;  %v447_v8 = vadd.f32 %v446_v5, %v436_v4  ;;  %v500_v14 = vunpack.c.l.s4 %v981_v13  ;;  %p902_p3 = por %p901_p2, %p900_p1 }
  0x38   : > { %v1129_v26 = vmax.f32 %v286_v23, %v287_v25 }
  0x39   : > { %v458_v10 = vadd.f32 %v457_v9, %v447_v8  ;;  %p903_p5 = pnand %p902_p3, %p896_p0 }
  0x3a   : > { %v291_v27 = vcombine.low %v1127_v24, %v1129_v26 }
  0x3b   : > { %v468_v18 = vrot.slane %v458_v10, %v1196_v12  ;;  %v472_v25 = vrot.slane %v458_v10, %v330_v31 }
  0x3c   : > { %v293_v28 = vsub.f32 %v1115_v6, %v291_v27  ;;  %v501_v27 = vunpack.c.0.s8 %v500_v14 }
  0x3e   : > { %v294_v29 = vmul.f32 1.442695, %v293_v28 }
  0x40   : > { %855 = vpow2.f32 %v294_v29 }
  0x4d   : > { %v1142_v35 = vpop.eup %855 }
  0x4e   : > { %v297_v37 = vcombine.high %v1142_v35, %v1142_v35  ;;  %v299_v38 = vsel %vm274_vm1, %v1142_v35, 0.0  ;;  %v1152_v39 = vrot.slane %v1142_v35, %v330_v31  ;;  %v377_v42 = vrot.slane %v1142_v35, %v1138_v32 }
  0x4f   : > { %v300_v41 = vrot.slane %v299_v38, 4  ;;  %v1158_v43 = vrot.slane %v1142_v35, %v380_v33  ;;  %v1162_v45 = vrot.slane %v1142_v35, %v354_v34  ;;  %v403_v50 = vrot.slane %v1142_v35, %v1145_v36 }
  0x50   : > { %v306_v44 = vsel %vm274_vm1, %v297_v37, 0.0  ;;  %v1165_v48 = vrot.slane %v377_v42, %v1138_v32  ;;  %v1172_v51 = vrot.slane %v1142_v35, %v406_v40  ;;  %v341_v0 = vrot.slane %v1152_v39, %v1196_v12 }
  0x51   : > { %v301_v46 = vadd.f32 %v300_v41, %v299_v38  ;;  %v307_v47 = vrot.slane %v306_v44, 4  ;;  %v391_v49 = vrot.slane %v1158_v43, %v1138_v32  ;;  %v1175_v54 = vrot.slane %v403_v50, %v1145_v36  ;;  %v495_v50 = vld [vmem:[#allocation2] sm:$0x3] }
  0x52   : > { %v417_v55 = vrot.slane %v1172_v51, %v1145_v36  ;;  %v504_v41 = vsub.s32 %v501_v27, %v1134_v30 }
  0x53   : > { %v302_v52 = vrot.slane %v301_v46, 2  ;;  %v308_v53 = vadd.f32 %v307_v47, %v306_v44 }
  0x55   : > { %v303_v56 = vadd.f32 %v302_v52, %v301_v46  ;;  %v309_v57 = vrot.slane %v308_v53, 2 }
  0x57   : > { %v304_v59 = vrot.slane %v303_v56, 1  ;;  %v310_v60 = vadd.f32 %v309_v57, %v308_v53 }
  0x59   : > { %v305_v61 = vadd.f32 %v304_v59, %v303_v56  ;;  %v311_v62 = vrot.slane %v310_v60, 1 }
  0x5b   : > { %v312_v2 = vadd.f32 %v311_v62, %v310_v60  ;;  %857 = vlog2.f32 %v305_v61  ;;  %v327_v60 = vrot.slane %v1142_v35, %v1196_v12 }
  0x5c   : > { %859 = vrcp.f32 %v305_v61 }
  0x5d   : > { %861 = vlog2.f32 %v312_v2  ;;  %v337_v63 = vrot.slane %v327_v60, %v1196_v12 }
  0x5e   : > { %863 = vrcp.f32 %v312_v2 }
  0x68   : > { %v858_v15 = vpop.eup %857 }
  0x69   : > { %v860_v16 = vpop.eup %859  ;;  %v314_v17 = vmul.f32 0.6931472, %v858_v15 }
  0x6a   : > { %v862_v20 = vpop.eup %861  ;;  %v479_v6 = vmul.f32 %v860_v16, %v305_v61 }
  0x6b   : > { %v864_v21 = vpop.eup %863  ;;  %v316_v22 = vmul.f32 0.6931472, %v862_v20  ;;  %v317_v23 = vadd.f32 %v314_v17, %v1127_v24  ;;  %v1205_v24 = vsub.s32 1, %v1134_v30 }
  0x6c   : > { %v480_v28 = vmul.f32 %v864_v21, %v312_v2  ;;  %v481_v29 = vsub.f32 2.0, %v479_v6 }
  0x6d   : > { %v318_v33 = vadd.f32 %v316_v22, %v1129_v26  ;;  %v475_v34 = vsub.f32 %v317_v23, %v468_v18  ;;  %v351_v61 = vrot.slane %v1142_v35, %v1205_v24  ;;  %v365_v2 = vrot.slane %v1162_v45, %v1205_v24 }
  0x6e   : > { %v482_v37 = vsub.f32 2.0, %v480_v28  ;;  %v483_v38 = vmul.f32 %v860_v16, %v481_v29  ;;  %v539_v28 = vld [vmem:[#allocation4] sm:$0x3] }
  0x6f   : > { %v476_v40 = vsub.f32 %v318_v33, %v472_v25  ;;  %v361_v1 = vrot.slane %v351_v61, %v1205_v24 }
  0x70   : > { %v484_v42 = vmul.f32 %v864_v21, %v482_v37 }
  0x71   : > { %v498_v44 = vcombine.low %v475_v34, %v476_v40 }
  0x72   : > { %v487_v46 = vcombine.low %v483_v38, %v484_v42  ;;  %v520_v38 = vld [vmem:[#allocation3] sm:$0x3] }
  0x73   : > { %v505_v47 = vrot.slane %v498_v44, %v504_v41 }
  0x75   : > { %v512_v52 = vrot.slane %v505_v47, %v504_v41 }
  0x77   : > { %v514_v53 = vadd.f32 %v512_v52, %v495_v50 }
  0x79   : > { %519 = vst.msk [vmem:[#allocation2] sm:$0x3] %vm1099_vm0, %v514_v53 }
  0x80   : > { %v561_v26 = vld [vmem:[#allocation2] sm:$0x3] }
  0x81   : > { %v566_v31 = vrot.slane %v561_v26, %v1196_v12  ;;  %v570_v56 = vrot.slane %v561_v26, %v1205_v24 }
  0x83   : > { %v574_v57 = vsel %vm573_vm7, %v566_v31, 0.0  ;;  %v575_v58 = vsel %vm573_vm7, %v570_v56, 0.0 }
  0x84   : > { %v576_v59 = vadd.f32 %v575_v58, %v574_v57 }
  0x86   : > { %577 = vadd.xlane.f32.xlu1 %v576_v59 }
  0xa7   : > { %v322_v30 = vpop.permute.xlu0 %321  ;;  %v372_v62 = vpop.permute.xlu1 %371 }
  0xa8   : > { %v342_v7 = vmul.f32 %v337_v63, %v322_v30  ;;  %v343_v8 = vmul.f32 %v341_v0, %v322_v30  ;;  %v392_v35 = vmul.f32 %v1165_v48, %v372_v62  ;;  %v393_v13 = vmul.f32 %v391_v49, %v372_v62 }
  0xac   : > { %v346_v4 = vpop.permute.xlu0 %345  ;;  %v398_v5 = vpop.permute.xlu1 %397 }
  0xad   : > { %v366_v9 = vmul.f32 %v361_v1, %v346_v4  ;;  %v367_v10 = vmul.f32 %v365_v2, %v346_v4  ;;  %v418_v39 = vmul.f32 %v1175_v54, %v398_v5  ;;  %v419_v45 = vmul.f32 %v417_v55, %v398_v5 }
  0xaf   : > { %v368_v14 = vadd.f32 %v366_v9, %v342_v7  ;;  %v369_v15 = vadd.f32 %v367_v10, %v343_v8 }
  0xb1   : > { %v394_v16 = vadd.f32 %v392_v35, %v368_v14  ;;  %v395_v17 = vadd.f32 %v393_v13, %v369_v15 }
  0xb3   : > { %v420_v18 = vadd.f32 %v418_v39, %v394_v16  ;;  %v421_v20 = vadd.f32 %v419_v45, %v395_v17 }
  0xb5   : > { %v427_v6 = vcombine.low %v420_v18, %v421_v20 }
  0xb7   : > { %v765_v21 = vrot.slane %v427_v6, 9  ;;  %v767_v22 = vrot.slane %v427_v6, 10  ;;  %v429_v48 = vsel %vm422_vm3, %v427_v6, 0.0  ;;  %v769_v43 = vrot.slane %v427_v6, 11 }
  0xb9   : > { %v440_v32 = vsel %vm431_vm4, %v765_v21, 0.0  ;;  %v451_v54 = vsel %vm442_vm5, %v767_v22, 0.0  ;;  %v462_v51 = vsel %vm453_vm6, %v769_v43, 0.0 }
  0xba   : > { %v441_v49 = vadd.f32 %v440_v32, %v429_v48 }
  0xbc   : > { %v452_v36 = vadd.f32 %v451_v54, %v441_v49 }
  0xbe   : > { %v463_v55 = vadd.f32 %v462_v51, %v452_v36 }
  0xc0   : > { %v489_v23 = vmul.f32 %v487_v46, %v463_v55 }
  0xc2   : > { %v493_v25 = vsub.f32 1.0, %v489_v23  ;;  %v547_v27 = vrot.slane %v489_v23, %v504_v41 }
  0xc4   : > { %v494_v29 = vmul.f32 %v1125_v19, %v493_v25  ;;  %v554_v33 = vrot.slane %v547_v27, %v504_v41 }
  0xc6   : > { %v528_v34 = vrot.slane %v494_v29, %v504_v41  ;;  %v556_v37 = vadd.f32 %v554_v33, %v539_v28 }
  0xc8   : > { %v535_v40 = vrot.slane %v528_v34, %v504_v41  ;;  %557 = vst.msk [vmem:[#allocation4] sm:$0x3] %vm1099_vm0, %v556_v37 }
  0xca   : > { %v537_v42 = vadd.f32 %v535_v40, %v520_v38 }
  0xcc   : > { %538 = vst.msk [vmem:[#allocation3] sm:$0x3] %vm1099_vm0, %v537_v42 }
  0xcf   : > { %v612_v11 = vld [vmem:[#allocation4] sm:$0x3] }
  0xd0   : > { %v617_v19 = vrot.slane %v612_v11, %v1196_v12  ;;  %v621_v50 = vrot.slane %v612_v11, %v1205_v24 }
  0xd2   : > { %v624_v26 = vsel %vm573_vm7, %v617_v19, 0.0  ;;  %v625_v3 = vsel %vm573_vm7, %v621_v50, 0.0 }
  0xd3   : > { %v587_v44 = vld [vmem:[#allocation3] sm:$0x3]  ;;  %v626_v31 = vadd.f32 %v625_v3, %v624_v26 }
  0xd4   : > { %v592_v46 = vrot.slane %v587_v44, %v1196_v12  ;;  %v596_v47 = vrot.slane %v587_v44, %v1205_v24 }
  0xd6   : > { %v599_v52 = vsel %vm573_vm7, %v592_v46, 0.0  ;;  %v600_v41 = vsel %vm573_vm7, %v596_v47, 0.0 }
  0xd7   : > { %v601_v53 = vadd.f32 %v600_v41, %v599_v52 }
  0xd9   : > { %602 = vadd.xlane.f32.xlu0 %v601_v53 }
  0xdd   : > { %627 = vadd.xlane.f32.xlu0 %v626_v31 }
 0x10f   : > { %v578_v56 = vpop.xlane.xlu1 %577 }
 0x110   : > { %v579_v57 = vrot.slane %v578_v56, 4 }
 0x112   : > { %v580_v58 = vadd.f32 %v579_v57, %v578_v56 }
 0x114   : > { %v581_v59 = vrot.slane %v580_v58, 2 }
 0x116   : > { %v582_v60 = vadd.f32 %v581_v59, %v580_v58 }
 0x118   : > { %v583_v12 = vrot.slane %v582_v60, 1 }
 0x11a   : > { %v584_v61 = vadd.f32 %v583_v12, %v582_v60 }
 0x11c   : > { %775 = vpush %v584_v61 }
 0x14d   : > { %s776_s9 = spop %775 }
 0x14e   : > { %v586_v14 = vstv %s776_s9 }
 0x162   : > { %v603_v24 = vpop.xlane.xlu0 %602 }
 0x163   : > { %v604_v30 = vrot.slane %v603_v24, 4 }
 0x165   : > { %v605_v62 = vadd.f32 %v604_v30, %v603_v24 }
 0x166   : > { %v628_v63 = vpop.xlane.xlu0 %627 }
 0x167   : > { %v606_v0 = vrot.slane %v605_v62, 2  ;;  %v629_v1 = vrot.slane %v628_v63, 4 }
 0x169   : > { %v630_v2 = vadd.f32 %v629_v1, %v628_v63  ;;  %v607_v4 = vadd.f32 %v606_v0, %v605_v62 }
 0x16b   : > { %v631_v5 = vrot.slane %v630_v2, 2  ;;  %v608_v7 = vrot.slane %v607_v4, 1 }
 0x16d   : > { %v632_v8 = vadd.f32 %v631_v5, %v630_v2  ;;  %v609_v9 = vadd.f32 %v608_v7, %v607_v4 }
 0x16f   : > { %777 = vpush %v609_v9  ;;  %v633_v10 = vrot.slane %v632_v8, 1 }
 0x171   : > { %v634_v35 = vadd.f32 %v633_v10, %v632_v8 }
 0x173   : > { %779 = vpush %v634_v35 }
 0x1a0   : > { %s778_s10 = spop %777 }
 0x1a1   : > { %v611_v13 = vstv %s778_s10 }
 0x1a2   : > { %v638_v15 = vsel %vm637_vm8, %v586_v14, %v611_v13 }
 0x1a4   : > { %s780_s21 = spop %779 }
 0x1a5   : > { %v636_v39 = vstv %s780_s21 }
 0x1a6   : > { %v640_v45 = vsel %vm639_vm9, %v638_v15, %v636_v39 }
 0x1a7   : > { %642 = vst.msk [vmem:[%s242_s18] sm:$0x1] %vm641_vm10, %v640_v45 }
 0x1a8   : > { %906 = shalt.err (!%p903_p5)
}
 0x1a9   : > { %s907_s6 = scalar_lea.hbm %s1255_s29, 16  ;;  %s911_s8 = scalar_lea.hbm %s1300_s3, 32 }
 0x1aa   : > { %p908_p6 = scmp.ne.s32.totalorder %s1255_s29, %s907_s6  ;;  %p912_p4 = scmp.lt.s32.totalorder %s1255_s29, %s1300_s3 }
 0x1ab   : > { %p913_p13 = scmp.lt.s32.totalorder %s911_s8, %s907_s6 }
 0x1ac   : > { %p909_p7 = pnand %p908_p6, %p1054_p9 }
 0x1ad   : > { %p914_p12 = por %p913_p13, %p912_p4 }
 0x1ae   : > { %p910_p10 = pneg %p909_p7 }
 0x1b0   : > { %p915_p8 = pnand %p914_p12, %p910_p10 }
 0x1b2   : > { %918 = shalt.err (!%p915_p8)
}
 0x1b3   : > { %783 = dma.vmem_to_hbm [thread:$0]  (%p1054_p9), %s658_s19, 16, %s1255_s29, %s644_s30  }
 0x1b4 PF: > { %s669_s11 = sand.u32 1, %s953_s12   ;;  %p1308_p11 = scmp.ne.s32.totalorder %s1304_s27, 0 }
 0x1b5   : > { %p1309_p0 = scmp.ge.s32.totalorder %s973_s17, 2  ;;  %s670_s18 = scalar_lea.sflag [#allocation7], %s669_s11 }
 0x1b7   : > { %p790_p1 = pnand %p1309_p0, %p1308_p11 }
 0x1b9   : > { %p791_p2 = pneg %p790_p1 }
 0x1bb   : > { %948 = dma.done.wait (%p791_p2), %s670_s18, 16  }
 0x1bc   : > { %950 = vsyncadd (%p791_p2), %s670_s18, 4294967280  ;;  %s19_s17 = sadd.s32 1, %s973_s17   ;;  %s1310_s12 = smov %s957_s13 }
 0x1bd   : > { %p16_p3 = scmp.ge.s32.totalorder %s19_s17, 4   ;;  %s1311_s13 = smov %s961_s14 }
 0x1be   : > { %s1312_s14 = smov %s1059_s26  ;;  %s1313_s15 = smov %s969_s16 }
 0x1bf   : > { %s1314_s16 = smov %s1316_s20  ;;  %18 = sbr.rel (!%p16_p3) target bundleno = 6 (0x6), region = 88 }
 0x1c4   :  { %674 = vsyncpa [#allocation6], 1 }
 0x1c5   :  { %676 = vsyncpa [#allocation6 + $0x1], 1 }
 0x1c6   :  { %677 = vsyncpa [#allocation7], 1 }
 0x1c7   :  { %679 = vsyncpa [#allocation7 + $0x1], 1 }

</bundles_post_ra>
